<compile_context>
chip_gen: v7x
topology: tpu7x:2x2x1
jax: 0.10.0
libtpu: 0.0.40
codegen_flags: <defaults>
</compile_context>

<pallas_src>
import functools

import numpy as np
import jax
import jax.numpy as jnp
from jax.experimental import pallas as pl
from jax.experimental.pallas import tpu as pltpu


# ---------------------------------------------------------------------------
# Bilinear resize weight matrices (half-pixel centers, no antialias)
# ---------------------------------------------------------------------------
def _bilinear_weight_matrix(out_size: int, in_size: int) -> np.ndarray:
    i = np.arange(out_size, dtype=np.float64)
    src = (i + 0.5) * in_size / out_size - 0.5
    i0 = np.floor(src)
    frac = src - i0
    i0c = np.clip(i0, 0, in_size - 1).astype(np.int64)
    i1c = np.clip(i0 + 1, 0, in_size - 1).astype(np.int64)
    w = np.zeros((out_size, in_size), dtype=np.float64)
    w[np.arange(out_size), i0c] += 1.0 - frac
    w[np.arange(out_size), i1c] += frac
    return w


# ---------------------------------------------------------------------------
# Kernel: one channel per grid step.
#   out[c] = scale[c] * (Wh @ x[c] @ Ww^T) + padc[c] * (1 - rh (x) rw) + bias[c]
# ---------------------------------------------------------------------------
def _resize_channel_kernel(scale_ref, bias_ref, padc_ref,
                           wh_ref, wwt_ref, rh_ref, rw_ref,
                           x_ref, o_ref):
    c = pl.program_id(0)

    # Width pass on the MXU: (H, W) @ (W, S) -> (H, S), f32 accumulation.
    x = x_ref[0].astype(jnp.bfloat16)
    xw = jnp.dot(x, wwt_ref[...], preferred_element_type=jnp.float32)

    # Height pass: (S, H) @ (H, S) -> (S, S).
    y = jnp.dot(wh_ref[...], xw.astype(jnp.bfloat16),
                preferred_element_type=jnp.float32)

    # Rank-1 pad-fill image (bilinear rows sum to 1 => pad contribution = 1 - rh x rw).
    pad_img = 1.0 - rh_ref[...] * rw_ref[...]          # (S,1)*(1,S) -> (S,S), VPU

    o_ref[0] = y * scale_ref[c] + (padc_ref[c] * pad_img + bias_ref[c])


def _vmem_limit_bytes(h: int, w: int, s: int) -> int:
    in_blk = h * w * 4                      # (1,H,W) f32 input block
    out_blk = s * s * 4                     # (1,S,S) f32 output block
    weights = (s * h + w * s) * 2 + 2 * s * 4  # bf16 Wh, Ww^T; f32 rh, rw
    interm = h * w * 2 + h * s * 6 + 2 * s * s * 4  # bf16 x, xw (f32+bf16), pad_img & y
    need = 2 * (in_blk + out_blk) + 2 * weights + interm + (1 << 20)
    try:
        cap = int(pltpu.get_tpu_info().vmem_capacity_bytes)
    except Exception:
        cap = 64 << 20                      # v7x per-TensorCore floor
    return int(max(min(need, (cap * 7) // 8), 16 << 20))


# ---------------------------------------------------------------------------
# Fused SquarePad(folded) + bilinear Resize + affine epilogue for all tensors.
# ---------------------------------------------------------------------------
def fused_pad_resize_normalize(tensors, params, image_size, is_padding=True):
    """tensors: list of (C_i, H, W) float arrays sharing H, W.
    params: list of (scale, bias, pad_fill) per tensor (output = scale*resize(pad)+bias).
    Returns list of (C_i, image_size, image_size) float32 arrays."""
    assert len(tensors) == len(params) and len(tensors) > 0
    h, w = int(tensors[0].shape[1]), int(tensors[0].shape[2])
    for x in tensors:
        assert tuple(x.shape[1:]) == (h, w), "all inputs must share spatial dims"
    s = int(image_size)

    # SquarePad geometry (reference module: floor padding on both sides of each dim).
    if is_padding:
        s_max = max(h, w)
        hp, wp = (s_max - h) // 2, (s_max - w) // 2
    else:
        hp = wp = 0
    h_pad, w_pad = h + 2 * hp, w + 2 * wp

    wh_full = _bilinear_weight_matrix(s, h_pad)      # (S, Hpad)
    ww_full = _bilinear_weight_matrix(s, w_pad)      # (S, Wpad)

    # Fold SquarePad into the weights: interior columns act on the raw input.
    wh_int = wh_full[:, hp:hp + h]                   # (S, H)
    ww_int = ww_full[:, wp:wp + w]                   # (S, W)
    wh = jnp.asarray(wh_int, dtype=jnp.bfloat16)                 # (S, H)
    wwt = jnp.asarray(ww_int.T, dtype=jnp.bfloat16)              # (W, S)
    # Pad-fill contribution is rank-1: pad_img = 1 - rh (x) rw (rows sum to 1).
    rh = jnp.asarray(wh_int.sum(axis=1).reshape(s, 1), jnp.float32)   # (S, 1)
    rw = jnp.asarray(ww_int.sum(axis=1).reshape(1, s), jnp.float32)   # (1, S)

    channel_counts = [int(x.shape[0]) for x in tensors]
    total_c = int(sum(channel_counts))

    # Per-CHANNEL affine coefficients as SMEM data (shared compiled kernel).
    scale = jnp.asarray(np.repeat([p[0] for p in params], channel_counts), jnp.float32)
    bias = jnp.asarray(np.repeat([p[1] for p in params], channel_counts), jnp.float32)
    padc = jnp.asarray(np.repeat([p[0] * p[2] for p in params], channel_counts),
                       jnp.float32)

    # Flatten all channels of all tensors into one (total_C, H, W) array.
    x_all = jnp.concatenate([x.astype(jnp.float32) for x in tensors], axis=0)

    smem = pl.BlockSpec(memory_space=pltpu.MemorySpace.SMEM)
    cost = pl.CostEstimate(
        flops=2 * total_c * (h * w * s + h * s * s),
        transcendentals=0,
        bytes_accessed=4 * total_c * (h * w + s * s) + 2 * (s * h + w * s) + 8 * s,
    )

    out = pl.pallas_call(
        _resize_channel_kernel,
        out_shape=jax.ShapeDtypeStruct((total_c, s, s), jnp.float32),
        grid=(total_c,),
        in_specs=[
            smem, smem, smem,                                   # scale, bias, padc
            pl.BlockSpec((s, h), lambda c: (0, 0)),             # Wh (resident)
            pl.BlockSpec((w, s), lambda c: (0, 0)),             # Ww^T (resident)
            pl.BlockSpec((s, 1), lambda c: (0, 0)),             # rh
            pl.BlockSpec((1, s), lambda c: (0, 0)),             # rw
            pl.BlockSpec((1, h, w), lambda c: (c, 0, 0)),       # one channel per step
        ],
        out_specs=pl.BlockSpec((1, s, s), lambda c: (c, 0, 0)),
        compiler_params=pltpu.CompilerParams(
            dimension_semantics=("parallel",),                  # megacore on v7x
            vmem_limit_bytes=_vmem_limit_bytes(h, w, s)),
        cost_estimate=cost,
    )(scale, bias, padc, wh, wwt, rh, rw, x_all)

    outs = []
    off = 0
    for ct in channel_counts:
        outs.append(out[off:off + ct])
        off += ct
    return outs


# ---------------------------------------------------------------------------
# DataAugmentationV2.forward (deterministic path: is_transform=False)
# ---------------------------------------------------------------------------
@functools.partial(jax.jit, static_argnames=("image_size", "is_padding"))
def data_augmentation_v2_forward(image, depth, gt=None, image_size=16, is_padding=True):
    tensors = [image, depth]
    #          (scale, bias, pad_fill)
    params = [(2.0, -1.0, 0.0),   # image: SquarePad fill 0, Normalize(0.5,0.5) => 2x-1
              (1.0, 0.0, 1.0)]    # depth: SquarePad fill 1, no normalization
    if gt is not None:
        tensors.append(gt)
        params.append((1.0, 0.0, 0.0))  # gt: SquarePad fill 0, no normalization
    outs = fused_pad_resize_normalize(tensors, params, image_size, is_padding)
    if gt is not None:
        return outs[0], outs[1], outs[2]
    return outs[0], outs[1], None


# ---------------------------------------------------------------------------
# Pure-JAX (f32) reference of the same deterministic forward, for validation.
# ---------------------------------------------------------------------------
def _reference_forward(image, depth, gt, image_size, is_padding=True):
    def pad(x, fill):
        if not is_padding:
            return x
        _, h, w = x.shape
        m = max(h, w)
        hp, wp = (m - h) // 2, (m - w) // 2
        return jnp.pad(x, ((0, 0), (hp, hp), (wp, wp)), constant_values=fill)

    def resize(x):
        _, h, w = x.shape
        wh = jnp.asarray(_bilinear_weight_matrix(image_size, h), jnp.float32)
        ww = jnp.asarray(_bilinear_weight_matrix(image_size, w), jnp.float32)
        return jnp.einsum('oh,chw,pw->cop', wh, x.astype(jnp.float32), ww)

    img = resize(pad(image, 0.0)) * 2.0 - 1.0
    dep = resize(pad(depth, 1.0))
    g = resize(pad(gt, 0.0)) if gt is not None else None
    return img, dep, g


if __name__ == "__main__":
    image_size = 16
    key = jax.random.PRNGKey(0)
    k_img, k_dep, k_gt = jax.random.split(key, 3)
    # PIL-like inputs as float CHW in [0, 1]; non-square to exercise SquarePad folding.
    image = jax.random.uniform(k_img, (3, 16, 12), dtype=jnp.float32)
    depth = jax.random.uniform(k_dep, (1, 16, 12), dtype=jnp.float32)
    gt = jax.random.uniform(k_gt, (1, 16, 12), dtype=jnp.float32)

    img_out, dep_out, gt_out = data_augmentation_v2_forward(
        image, depth, gt, image_size=image_size, is_padding=True
    )
    jax.block_until_ready(img_out)
    jax.block_until_ready(dep_out)
    jax.block_until_ready(gt_out)

    assert img_out.shape == (3, image_size, image_size)
    assert dep_out.shape == (1, image_size, image_size)
    assert gt_out.shape == (1, image_size, image_size)

    # Loose numerical check vs f32 reference (kernel matmuls run in bf16).
    img_ref, dep_ref, gt_ref = _reference_forward(image, depth, gt, image_size, True)
    for got, ref in ((img_out, img_ref), (dep_out, dep_ref), (gt_out, gt_ref)):
        err = float(jnp.max(jnp.abs(got - ref)))
        assert err < 0.1, f"max abs error {err} too large"

    # Also exercise the gt=None path once.
    img2, dep2, gt2 = data_augmentation_v2_forward(
        image, depth, None, image_size=image_size, is_padding=True
    )
    jax.block_until_ready(img2)
    assert gt2 is None and img2.shape == (3, image_size, image_size)

    print("KERNEL_OK")
</pallas_src>

<mosaic_0001>
module attributes {stable_mosaic.version = 11 : i64} {
  func.func @_resize_channel_kernel(%arg0: i32, %arg1: memref<5xf32, #tpu.memory_space<smem>>, %arg2: memref<5xf32, #tpu.memory_space<smem>>, %arg3: memref<5xf32, #tpu.memory_space<smem>>, %arg4: memref<16x16xbf16, #tpu.memory_space<vmem>>, %arg5: memref<12x16xbf16, #tpu.memory_space<vmem>>, %arg6: memref<16x1xf32, #tpu.memory_space<vmem>>, %arg7: memref<1x16xf32, #tpu.memory_space<vmem>>, %arg8: memref<1x16x12xf32, #tpu.memory_space<vmem>>, %arg9: memref<1x16x16xf32, #tpu.memory_space<vmem>>) attributes {dimension_semantics = [#tpu.dimension_semantics<parallel>], iteration_bounds = array<i64: 5>, scalar_prefetch = 0 : i64, scratch_operands = 0 : i64, tpu.core_type = #tpu.core_type<tc>, window_params = [{transform_indices = @transform_0, window_bounds = array<i64: 5>}, {transform_indices = @transform_1, window_bounds = array<i64: 5>}, {transform_indices = @transform_2, window_bounds = array<i64: 5>}, {pipeline_mode = #tpu.pipeline_mode<synchronous>, transform_indices = @transform_3, window_bounds = array<i64: 16, 16>}, {pipeline_mode = #tpu.pipeline_mode<synchronous>, transform_indices = @transform_4, window_bounds = array<i64: 12, 16>}, {pipeline_mode = #tpu.pipeline_mode<synchronous>, transform_indices = @transform_5, window_bounds = array<i64: 16, 1>}, {pipeline_mode = #tpu.pipeline_mode<synchronous>, transform_indices = @transform_6, window_bounds = array<i64: 1, 16>}, {transform_indices = @transform_7, window_bounds = array<i64: 1, 16, 12>}, {transform_indices = @transform_8, window_bounds = array<i64: 1, 16, 16>}]} {
    %c0 = arith.constant 0 : index
    %c0_0 = arith.constant 0 : index
    %c0_1 = arith.constant 0 : index
    %0 = vector.load %arg8[%c0, %c0_0, %c0_1] : memref<1x16x12xf32, #tpu.memory_space<vmem>>, vector<1x16x12xf32>
    %1 = vector.shape_cast %0 : vector<1x16x12xf32> to vector<16x12xf32>
    %2 = arith.truncf %1 : vector<16x12xf32> to vector<16x12xbf16>
    %c0_2 = arith.constant 0 : index
    %c0_3 = arith.constant 0 : index
    %3 = vector.load %arg5[%c0_2, %c0_3] : memref<12x16xbf16, #tpu.memory_space<vmem>>, vector<12x16xbf16>
    %cst = arith.constant dense<0.000000e+00> : vector<16x16xf32>
    %4 = tpu.matmul %2, %3, %cst {dimension_numbers = #tpu.dot_dimension_numbers<[1], [0], [0], [1], [0, 0, 1, 1], [], []>} : vector<16x12xbf16>, vector<12x16xbf16>, vector<16x16xf32> -> vector<16x16xf32>
    %c0_4 = arith.constant 0 : index
    %c0_5 = arith.constant 0 : index
    %5 = vector.load %arg4[%c0_4, %c0_5] : memref<16x16xbf16, #tpu.memory_space<vmem>>, vector<16x16xbf16>
    %6 = arith.truncf %4 : vector<16x16xf32> to vector<16x16xbf16>
    %cst_6 = arith.constant dense<0.000000e+00> : vector<16x16xf32>
    %7 = tpu.matmul %5, %6, %cst_6 {dimension_numbers = #tpu.dot_dimension_numbers<[1], [0], [0], [1], [0, 0, 1, 1], [], []>} : vector<16x16xbf16>, vector<16x16xbf16>, vector<16x16xf32> -> vector<16x16xf32>
    %c0_7 = arith.constant 0 : index
    %c0_8 = arith.constant 0 : index
    %8 = vector.load %arg6[%c0_7, %c0_8] : memref<16x1xf32, #tpu.memory_space<vmem>>, vector<16x1xf32>
    %c0_9 = arith.constant 0 : index
    %c0_10 = arith.constant 0 : index
    %9 = vector.load %arg7[%c0_9, %c0_10] : memref<1x16xf32, #tpu.memory_space<vmem>>, vector<1x16xf32>
    %10 = vector.broadcast %8 : vector<16x1xf32> to vector<16x16xf32>
    %11 = vector.broadcast %9 : vector<1x16xf32> to vector<16x16xf32>
    %12 = arith.mulf %10, %11 : vector<16x16xf32>
    %cst_11 = arith.constant 1.000000e+00 : f32
    %13 = vector.broadcast %cst_11 : f32 to vector<16x16xf32>
    %14 = arith.subf %13, %12 : vector<16x16xf32>
    %15 = arith.index_cast %arg0 : i32 to index
    %16 = memref.load %arg1[%15] : memref<5xf32, #tpu.memory_space<smem>>
    %17 = vector.broadcast %16 : f32 to vector<16x16xf32>
    %18 = arith.mulf %7, %17 : vector<16x16xf32>
    %19 = arith.index_cast %arg0 : i32 to index
    %20 = memref.load %arg3[%19] : memref<5xf32, #tpu.memory_space<smem>>
    %21 = vector.broadcast %20 : f32 to vector<16x16xf32>
    %22 = arith.mulf %21, %14 : vector<16x16xf32>
    %23 = arith.index_cast %arg0 : i32 to index
    %24 = memref.load %arg2[%23] : memref<5xf32, #tpu.memory_space<smem>>
    %25 = vector.broadcast %24 : f32 to vector<16x16xf32>
    %26 = arith.addf %22, %25 : vector<16x16xf32>
    %27 = arith.addf %18, %26 : vector<16x16xf32>
    %c0_12 = arith.constant 0 : index
    %c0_13 = arith.constant 0 : index
    %c0_14 = arith.constant 0 : index
    %28 = vector.load %arg9[%c0_12, %c0_13, %c0_14] : memref<1x16x16xf32, #tpu.memory_space<vmem>>, vector<1x16x16xf32>
    %29 = vector.shape_cast %28 : vector<1x16x16xf32> to vector<16x16xf32>
    %30 = vector.shape_cast %27 : vector<16x16xf32> to vector<1x16x16xf32>
    tpu.vector_store %arg9[%c0_12, %c0_13, %c0_14], %30 {strides = array<i32>} : memref<1x16x16xf32, #tpu.memory_space<vmem>>, vector<1x16x16xf32>,
    return
  }
  func.func @transform_0(%arg0: i32) -> i32 {
    %c0_i32 = arith.constant 0 : i32
    %c0_i32_0 = arith.constant 0 : i32
    return %c0_i32 : i32
  }
  func.func @transform_1(%arg0: i32) -> i32 {
    %c0_i32 = arith.constant 0 : i32
    %c0_i32_0 = arith.constant 0 : i32
    return %c0_i32 : i32
  }
  func.func @transform_2(%arg0: i32) -> i32 {
    %c0_i32 = arith.constant 0 : i32
    %c0_i32_0 = arith.constant 0 : i32
    return %c0_i32 : i32
  }
  func.func @transform_3(%arg0: i32) -> (i32, i32) {
    %c0_i32 = arith.constant 0 : i32
    %c0_i32_0 = arith.constant 0 : i32
    %c0_i32_1 = arith.constant 0 : i32
    return %c0_i32, %c0_i32_0 : i32, i32
  }
  func.func @transform_4(%arg0: i32) -> (i32, i32) {
    %c0_i32 = arith.constant 0 : i32
    %c0_i32_0 = arith.constant 0 : i32
    %c0_i32_1 = arith.constant 0 : i32
    return %c0_i32, %c0_i32_0 : i32, i32
  }
  func.func @transform_5(%arg0: i32) -> (i32, i32) {
    %c0_i32 = arith.constant 0 : i32
    %c0_i32_0 = arith.constant 0 : i32
    %c0_i32_1 = arith.constant 0 : i32
    return %c0_i32, %c0_i32_0 : i32, i32
  }
  func.func @transform_6(%arg0: i32) -> (i32, i32) {
    %c0_i32 = arith.constant 0 : i32
    %c0_i32_0 = arith.constant 0 : i32
    %c0_i32_1 = arith.constant 0 : i32
    return %c0_i32, %c0_i32_0 : i32, i32
  }
  func.func @transform_7(%arg0: i32) -> (i32, i32, i32) {
    %c0_i32 = arith.constant 0 : i32
    %c0_i32_0 = arith.constant 0 : i32
    %c0_i32_1 = arith.constant 0 : i32
    return %arg0, %c0_i32, %c0_i32_0 : i32, i32, i32
  }
  func.func @transform_8(%arg0: i32) -> (i32, i32, i32) {
    %c0_i32 = arith.constant 0 : i32
    %c0_i32_0 = arith.constant 0 : i32
    %c0_i32_1 = arith.constant 0 : i32
    return %arg0, %c0_i32, %c0_i32_0 : i32, i32, i32
  }
}

</mosaic_0001>

<bundles_post_ra>
// kernel: data_augmentation_v2_forward.1
= control target key start
LH: loop header
LB: loop body
LE: loop exit
PB: predicated region body
PF: predicated region fallthrough
CT: control target
= control target key end

     0   :  { %13 = vsyncpa [#allocation3], 0  ;;  %s885_s0 = inlined_call_operand.vmem [shape: f32[5], index: 0, kind: input, shape index: {}]   ;;  %s886_s1 = inlined_call_operand.vmem [shape: f32[5], index: 1, kind: input, shape index: {}]   ;;  %s887_s2 = inlined_call_operand.vmem [shape: f32[5], index: 2, kind: input, shape index: {}]   ;;  %s888_s3 = inlined_call_operand.vmem [shape: bf16[16,16], index: 3, kind: input, shape index: {}]   ;;  %s889_s4 = inlined_call_operand.vmem [shape: bf16[12,16], index: 4, kind: input, shape index: {}]   ;;  %s890_s5 = inlined_call_operand.vmem [shape: f32[16,1], index: 5, kind: input, shape index: {}]   ;;  %s891_s6 = inlined_call_operand.vmem [shape: f32[1,16], index: 6, kind: input, shape index: {}]   ;;  %s892_s7 = inlined_call_operand.vmem [shape: f32[5,16,12], index: 7, kind: input, shape index: {}]   ;;  %s893_s8 = inlined_call_operand.vmem [shape: f32[5,16,16], index: 8, kind: output, shape index: {}]  }
   0x1   :  { %14 = vsyncpa [#allocation5], 0  ;;  %s780_s27 = smov 0  }
   0x2 LB: > { %s786_s28 = sadd.s32 4294967295, %s727_s27   ;;  %p585_p0 = scmp.ge.s32.totalorder %s727_s27, 1  ;;  %s727_s27 = sphi %s780_s27, %s20_s27  }
   0x3   : > { %p224_p1 = scmp.lt.s32.totalorder %s727_s27, 6  ;;  %s248_s9 = sshll.u32 %s886_s1, 4  ;;  %s249_s9 = int_to_ptr.vmem [resolvable:$true] %s248_s9 }
   0x4   : > { %p894_p3 = scmp.eq.s32.totalorder %s786_s28, 0  ;;  %s237_s13 = sshll.u32 %s885_s0, 4  ;;  %s238_s13 = int_to_ptr.vmem [resolvable:$true] %s237_s13 }
   0x5   : > { %p793_p2 = pnand %p585_p0, %p224_p1  ;;  %s259_s16 = sshll.u32 %s887_s2, 4  ;;  %s812_s16 = int_to_ptr.vmem [resolvable:$true] %s259_s16 }
   0x6   : > { %s668_s18 = scalar_lea.vmem %s249_s9, 16  ;;  %p676_p10 = scmp.lt.s32.totalorder %s249_s9, %s249_s9 }
   0x7   : > { %s896_s10 = scalar_select %p793_p2, 1, 0 }
   0x8   : > { %p635_p4 = pneg %p793_p2  ;;  %p669_p6 = scmp.ne.s32.totalorder %s249_s9, %s668_s18 }
   0x9   : > { %p677_p11 = scmp.lt.s32.totalorder %s668_s18, %s668_s18 }
   0xa   : > { %p808_p5 = pnand %p894_p3, %p635_p4 }
   0xb   : > { %p678_p12 = por %p677_p11, %p676_p10 }
   0xc   : > { %p670_p7 = pneg %p808_p5 }
   0xe   : > { %p671_p8 = pnand %p670_p7, %p669_p6 }
  0x10   : > { %p672_p9 = pneg %p671_p8 }
  0x12   : > { %p679_p13 = pnand %p678_p12, %p672_p9 }
  0x14   : > { %682 = shalt.err (!%p679_p13)
}
  0x15   : > { %s729_s19 = smov [#allocation4]   ;;  %s683_s20 = scalar_lea.vmem %s238_s13, 16 }
  0x16   : > { %641 = dma.vmem_to_smem (!%p808_p5), %s249_s9, 16, %s729_s19, [#allocation5]  }
  0x17   : > { %p684_p0 = scmp.ne.s32.totalorder %s238_s13, %s683_s20  ;;  %p691_p3 = scmp.lt.s32.totalorder %s238_s13, %s238_s13 }
  0x18   : > { %p692_p2 = scmp.lt.s32.totalorder %s683_s20, %s683_s20 }
  0x19   : > { %p686_p1 = pnand %p684_p0, %p670_p7 }
  0x1a   : > { %p693_p6 = por %p692_p2, %p691_p3 }
  0x1b   : > { %p687_p4 = pneg %p686_p1 }
  0x1d   : > { %p694_p8 = pnand %p693_p6, %p687_p4 }
  0x1f   : > { %697 = shalt.err (!%p694_p8)
}
  0x20   : > { %s730_s21 = smov [#allocation2]   ;;  %s698_s22 = scalar_lea.vmem %s812_s16, 16 }
  0x21   : > { %638 = dma.vmem_to_smem (!%p808_p5), %s238_s13, 16, %s730_s21, [#allocation3]  }
  0x22   : > { %p699_p9 = scmp.ne.s32.totalorder %s812_s16, %s698_s22  ;;  %p706_p12 = scmp.lt.s32.totalorder %s812_s16, %s812_s16 }
  0x23   : > { %p707_p13 = scmp.lt.s32.totalorder %s698_s22, %s698_s22 }
  0x24   : > { %p701_p10 = pnand %p699_p9, %p670_p7 }
  0x25   : > { %p708_p2 = por %p707_p13, %p706_p12 }
  0x26   : > { %p702_p11 = pneg %p701_p10 }
  0x28   : > { %p709_p3 = pnand %p708_p2, %p702_p11 }
  0x2a   : > { %712 = shalt.err (!%p709_p3)
}
  0x2b   : > { %s731_s23 = smov [#allocation6]   ;;  %p898_p0 = scmp.ne.s32.totalorder %s896_s10, 0 }
  0x2c   : > { %644 = dma.vmem_to_smem (!%p808_p5), %s812_s16, 16, %s731_s23, [#allocation5]  }
  0x2d   : > { %292 = sbr.rel (%p898_p0) target bundleno = 506 (0x1fa), region = 52  ;;  %p899_p1 = scmp.eq.s32.totalorder (!%p898_p0), %s786_s28, 0 }
  0x34   : > { %718 = dma.done.wait (%p899_p1), [#allocation3], 16   ;;  %p900_p7 = pmov %p899_p1 }
  0x35   : > { %p901_p4 = pmov %p899_p1 }
  0x36   : > { %720 = vsyncadd (%p900_p7), [#allocation3], 4294967280 }
  0x37   : > { %722 = dma.done.wait (%p901_p4), [#allocation5], 32   ;;  %p902_p6 = pmov %p899_p1 }
  0x39   : > { %724 = vsyncadd (%p902_p6), [#allocation5], 4294967264 }
  0x3a   : > { %306 = sfence }
  0x3b   : > { %vm360_vm0 = vcmask 1045504   ;;  %v732_v0 = vmov 0.0   ;;  %v666_v1 = vld [vmem:[%s889_s4] sm:$0x3f]   ;;  %p335_p5 = scmp.lt.s32.totalorder %s786_s28, 4  ;;  %vm733_vm1 = vmmov 0  }
  0x3c   : > { %611 = vmatprep.subr.bf16.mxu0 %v732_v0  ;;  %617 = vmatprep.subr.bf16.mxu1 %v732_v0  ;;  %v362_v2 = vsel %vm360_vm0, %v666_v1, 0  ;;  %vm356_vm2 = vcmask 97280   ;;  %v458_v6 = vld [vmem:[%s890_s5] sm:$0xff]  ;;  %v734_v7 = vmov 0   ;;  %v459_v8 = vld [vmem:[%s890_s5 + $0x8] sm:$0xff]  ;;  %vm413_vm3 = vcmask 130048  }
  0x3d   : > { %613 = vmatprep.mubr.msk.bf16.mxu0 %vm733_vm1, %v732_v0  ;;  %619 = vmatprep.mubr.msk.bf16.mxu1 %vm733_vm1, %v732_v0  ;;  %s851_s26 = scalar_select %p335_p5, %s786_s28, 4  ;;  %v667_v14 = vld [vmem:[%s888_s3] sm:$0xff]  }
  0x3e   : > { %612 = vmatpush3.bf16.msra.mxu0 %v362_v2  ;;  %665 = vset.pattern.permute.xlu0 %v734_v7  ;;  %v602_v16 = vld [vmem:[%s891_s6] ss:$0 sm:$0xff]  ;;  %s485_s19 = sld [smem:[#allocation6 + %s786_s28]] }
  0x3f   : > { %s605_s29 = sshll.u32 %s851_s26, 4  ;;  %463 = vperm.xlu0 %665, %v458_v6   ;;  %s481_s20 = sld [smem:[#allocation2 + %s786_s28]] }
  0x40   : > { %s339_s10 = scalar_lea.vmem %s892_s7, %s605_s29  ;;  %s489_s21 = sld [smem:[#allocation4 + %s786_s28]] }
  0x41   : > { %v346_v3 = vld [vmem:[%s339_s10] sm:$0xff]  ;;  %v347_v4 = vld [vmem:[%s339_s10 + $0x8] sm:$0xff]  ;;  %s344_s24 = scalar_lea.vmem %s893_s8, %s605_s29 }
  0x42   : > { %v348_v5 = vpack.c.bf16 %v347_v4, %v346_v3 }
  0x43   : > { %468 = vperm.xlu0 %665, %v459_v8  }
  0x44   : > { %614 = vmatmul.mubr.msk.bf16.vlgmr.msra.gmra.mrb[0].mxu0 %vm356_vm2, %v348_v5  ;;  %v486_v21 = vstv %s485_s19 }
  0x45   : > { %v482_v24 = vstv %s481_s20 }
  0x46   : > { %v490_v25 = vstv %s489_s21 }
  0xbe   : > { %v464_v15 = vpop.permute.xlu0 %463 }
  0xbf   : > { %v477_v18 = vmul.f32 %v602_v16, %v464_v15 }
  0xc1   : > { %v479_v20 = vsub.f32 1.0, %v477_v18 }
  0xc2   : > { %v469_v17 = vpop.permute.xlu0 %468 }
  0xc3   : > { %v478_v19 = vmul.f32 %v602_v16, %v469_v17  ;;  %v487_v23 = vmul.f32 %v486_v21, %v479_v20 }
  0xc5   : > { %v480_v22 = vsub.f32 1.0, %v478_v19  ;;  %v491_v29 = vadd.f32 %v490_v25, %v487_v23 }
  0xc7   : > { %v488_v26 = vmul.f32 %v486_v21, %v480_v22 }
  0xc9   : > { %v492_v34 = vadd.f32 %v490_v25, %v488_v26 }
 0x117   : > { %v398_v9 = vpop.f32.mrb[0].mxu0 }
 0x118   : > { %v615_v10 = vpop.f32.mrb[1].mxu0 }
 0x119   : > { %v401_v11 = vpop.f32.mrb[2].mxu0 }
 0x11a   : > { %v407_v12 = vpack.c.bf16 %v401_v11, %v398_v9  ;;  %v616_v13 = vpop.f32.mrb[3].mxu0 }
 0x11c   : > { %618 = vmatpush3.bf16.msra.mxu1 %v407_v12 }
 0x11f   : > { %620 = vmatmul.mubr.msk.bf16.vlgmr.msra.gmra.mrb[0].mxu1 %vm413_vm3, %v667_v14 }
 0x1f2   : > { %v451_v27 = vpop.f32.mrb[0].mxu1 }
 0x1f3   : > { %v483_v28 = vmul.f32 %v482_v24, %v451_v27  ;;  %v621_v30 = vpop.f32.mrb[1].mxu1 }
 0x1f4   : > { %v454_v31 = vpop.f32.mrb[2].mxu1 }
 0x1f5   : > { %v493_v32 = vadd.f32 %v491_v29, %v483_v28  ;;  %v484_v33 = vmul.f32 %v482_v24, %v454_v31  ;;  %v622_v35 = vpop.f32.mrb[3].mxu1 }
 0x1f7   : > { %495 = vst.msk [vmem:[%s344_s24] sm:$0xff] %vm413_vm3, %v493_v32  ;;  %v494_v36 = vadd.f32 %v492_v34, %v484_v33 }
 0x1f9   : > { %496 = vst.msk [vmem:[%s344_s24 + $0x8] sm:$0xff] %vm413_vm3, %v494_v36 }
 0x1fa PF: > { %s20_s27 = sadd.s32 1, %s727_s27  }
 0x1fb   : > { %p17_p8 = scmp.ge.s32.totalorder %s20_s27, 7  }
 0x1fd   :  { %19 = sbr.rel (!%p17_p8) target bundleno = 2 (0x2), region = 95 }
 0x204   :  { %518 = vsyncpa [#allocation3], 1 }
 0x205   :  { %520 = vsyncpa [#allocation3 + $0x1], 1 }
 0x206   :  { %521 = vsyncpa [#allocation5], 1 }

</bundles_post_ra>
